<compile_context>
chip_gen: v7x
topology: tpu7x:2x2x1
jax: 0.10.0
libtpu: 0.0.40
codegen_flags: <defaults>
</compile_context>

<pallas_src>
import math
import jax
import jax.numpy as jnp
from jax.experimental import pallas as pl
from jax.experimental.pallas import tpu as pltpu


def layernorm_kernel(x_ref, alpha_ref, beta_ref, o_ref, *, epsilon, n):
    x = x_ref[...].astype(jnp.float32)                 # (TB, H)

    # Fused single-pass moments: one sweep produces both reductions.
    s1 = jnp.sum(x, axis=-1, keepdims=True)            # (TB, 1)
    s2 = jnp.sum(x * x, axis=-1, keepdims=True)        # (TB, 1)
    mean = s1 * (1.0 / n)
    # torch.var default is unbiased (divide by N - 1):
    #   var = (sum(x^2) - n*mean^2) / (n - 1) = (s2 - mean*s1) / (n - 1)
    var = (s2 - mean * s1) * (1.0 / (n - 1))
    inv_std = jax.lax.rsqrt(var + epsilon)

    alpha = alpha_ref[...].astype(jnp.float32)          # (1, H), row-broadcast
    beta = beta_ref[...].astype(jnp.float32)
    o_ref[...] = ((x - mean) * inv_std * alpha + beta).astype(o_ref.dtype)


def _choose_batch_tile(b, h, itemsize):
    """Largest batch tile (multiple of 8, or full b) whose double-buffered
    in+out tiles stay within a VMEM budget safe on v5e/v6e/v7x."""
    budget_bytes = 20 * 1024 * 1024          # for x/out tiles (2 bufs each)
    per_row = 2 * 2 * h * itemsize           # 2 buffers x (in + out) per row
    tb = budget_bytes // max(per_row, 1)
    if tb >= b:
        return b                              # full dim: always layout-legal
    tb = max(8, (tb // 8) * 8)                # sublane rule: multiple of 8
    return min(tb, b)


def layer_norm(x, alpha, beta, epsilon=1e-06, learnable=True):
    """x: arbitrary shape (B, ...), flattened to (B, input_size) internally."""
    orig_shape = x.shape
    b = orig_shape[0]
    x2d = x.reshape(b, -1)
    h = x2d.shape[1]
    assert h > 1, "unbiased variance needs at least 2 features"
    assert alpha.shape == (1, h) and beta.shape == (1, h)

    if not learnable:
        # Non-learnable path skips the affine; emulate with alpha=1, beta=0.
        alpha = jnp.ones_like(alpha)
        beta = jnp.zeros_like(beta)

    itemsize = jnp.dtype(x2d.dtype).itemsize
    tb = _choose_batch_tile(b, h, itemsize)
    grid = (pl.cdiv(b, tb),)

    kernel = lambda xr, ar, br, orf: layernorm_kernel(
        xr, ar, br, orf, epsilon=epsilon, n=h)

    # Enough VMEM for double-buffered in/out tiles + params + f32 temps,
    # capped well under v7x's 64 MiB physical VMEM.
    tile_bytes = tb * h * itemsize
    vmem_limit = min(48 * 1024 * 1024,
                     max(16 * 1024 * 1024, 6 * tile_bytes + 4 * h * 4))

    cost = pl.CostEstimate(
        flops=8 * b * h,
        transcendentals=b,                      # one rsqrt per row
        bytes_accessed=2 * b * h * itemsize + 2 * h * 4,
    )

    out = pl.pallas_call(
        kernel,
        out_shape=jax.ShapeDtypeStruct((b, h), x2d.dtype),
        grid_spec=pltpu.PrefetchScalarGridSpec(
            num_scalar_prefetch=0,
            grid=grid,
            in_specs=[
                pl.BlockSpec((tb, h), lambda i: (i, 0)),   # streamed row block
                pl.BlockSpec((1, h), lambda i: (0, 0)),    # alpha: stays resident
                pl.BlockSpec((1, h), lambda i: (0, 0)),    # beta:  stays resident
            ],
            out_specs=pl.BlockSpec((tb, h), lambda i: (i, 0)),
        ),
        compiler_params=pltpu.CompilerParams(
            dimension_semantics=("parallel",),
            vmem_limit_bytes=vmem_limit,
        ),
        cost_estimate=cost,
    )(x2d, alpha, beta)

    return out.reshape(orig_shape)


def layer_norm_ref(x, alpha, beta, epsilon=1e-06):
    b = x.shape[0]
    x2d = x.reshape(b, -1).astype(jnp.float32)
    mean = jnp.mean(x2d, axis=1, keepdims=True)
    var = jnp.var(x2d, axis=1, keepdims=True, ddof=1)   # unbiased, like torch.var
    y = (x2d - mean) / jnp.sqrt(var + epsilon)
    y = alpha * y + beta
    return y.reshape(x.shape)


if __name__ == "__main__":
    # Small shapes; exercise the view(B, -1) flattening path.
    batch, c, w = 8, 4, 16
    input_size = c * w                                  # 64
    key = jax.random.PRNGKey(0)
    kx, ka, kb = jax.random.split(key, 3)

    x = jax.random.normal(kx, (batch, c, w), dtype=jnp.float32)

    # reset_parameters(): uniform(-std, std), std = 1/sqrt(input_size)
    std = 1.0 / math.sqrt(input_size)
    alpha = jax.random.uniform(ka, (1, input_size), dtype=jnp.float32,
                               minval=-std, maxval=std)
    beta = jax.random.uniform(kb, (1, input_size), dtype=jnp.float32,
                              minval=-std, maxval=std)

    out = layer_norm(x, alpha, beta, epsilon=1e-06, learnable=True)
    out = jax.block_until_ready(out)

    ref = layer_norm_ref(x, alpha, beta, epsilon=1e-06)
    assert out.shape == x.shape
    assert jnp.allclose(out, ref, atol=1e-5, rtol=1e-5), "mismatch vs reference"

    # Also check the non-learnable (no affine) path.
    out_nl = jax.block_until_ready(
        layer_norm(x, alpha, beta, epsilon=1e-06, learnable=False))
    ref_nl = layer_norm_ref(x, jnp.ones_like(alpha), jnp.zeros_like(beta))
    assert jnp.allclose(out_nl, ref_nl, atol=1e-5, rtol=1e-5), "mismatch (non-learnable)"

    print("KERNEL_OK")
</pallas_src>

<mosaic_0001>
module attributes {stable_mosaic.version = 11 : i64} {
  func.func @_lambda_(%arg0: i32, %arg1: memref<8x64xf32, #tpu.memory_space<vmem>>, %arg2: memref<1x64xf32, #tpu.memory_space<vmem>>, %arg3: memref<1x64xf32, #tpu.memory_space<vmem>>, %arg4: memref<8x64xf32, #tpu.memory_space<vmem>>) attributes {dimension_semantics = [#tpu.dimension_semantics<parallel>], iteration_bounds = array<i64: 1>, scalar_prefetch = 0 : i64, scratch_operands = 0 : i64, tpu.core_type = #tpu.core_type<tc>, window_params = [{transform_indices = @transform_0, window_bounds = array<i64: 8, 64>}, {pipeline_mode = #tpu.pipeline_mode<synchronous>, transform_indices = @transform_1, window_bounds = array<i64: 1, 64>}, {pipeline_mode = #tpu.pipeline_mode<synchronous>, transform_indices = @transform_2, window_bounds = array<i64: 1, 64>}, {transform_indices = @transform_3, window_bounds = array<i64: 8, 64>}]} {
    %c0 = arith.constant 0 : index
    %c0_0 = arith.constant 0 : index
    %0 = vector.load %arg1[%c0, %c0_0] : memref<8x64xf32, #tpu.memory_space<vmem>>, vector<8x64xf32>
    %cst = arith.constant dense<0.000000e+00> : vector<8xf32>
    %1 = vector.multi_reduction <add>, %0, %cst [1] : vector<8x64xf32> to vector<8xf32>
    %2 = vector.shape_cast %1 : vector<8xf32> to vector<8x1xf32>
    %3 = arith.mulf %0, %0 : vector<8x64xf32>
    %cst_1 = arith.constant dense<0.000000e+00> : vector<8xf32>
    %4 = vector.multi_reduction <add>, %3, %cst_1 [1] : vector<8x64xf32> to vector<8xf32>
    %5 = vector.shape_cast %4 : vector<8xf32> to vector<8x1xf32>
    %cst_2 = arith.constant 1.562500e-02 : f32
    %6 = vector.broadcast %cst_2 : f32 to vector<8x1xf32>
    %7 = arith.mulf %2, %6 : vector<8x1xf32>
    %8 = arith.mulf %7, %2 : vector<8x1xf32>
    %9 = arith.subf %5, %8 : vector<8x1xf32>
    %cst_3 = arith.constant 0.0158730168 : f32
    %10 = vector.broadcast %cst_3 : f32 to vector<8x1xf32>
    %11 = arith.mulf %9, %10 : vector<8x1xf32>
    %cst_4 = arith.constant 9.99999997E-7 : f32
    %12 = vector.broadcast %cst_4 : f32 to vector<8x1xf32>
    %13 = arith.addf %11, %12 : vector<8x1xf32>
    %14 = math.rsqrt %13 : vector<8x1xf32>
    %c0_5 = arith.constant 0 : index
    %c0_6 = arith.constant 0 : index
    %15 = vector.load %arg2[%c0_5, %c0_6] : memref<1x64xf32, #tpu.memory_space<vmem>>, vector<1x64xf32>
    %c0_7 = arith.constant 0 : index
    %c0_8 = arith.constant 0 : index
    %16 = vector.load %arg3[%c0_7, %c0_8] : memref<1x64xf32, #tpu.memory_space<vmem>>, vector<1x64xf32>
    %17 = vector.broadcast %7 : vector<8x1xf32> to vector<8x64xf32>
    %18 = arith.subf %0, %17 : vector<8x64xf32>
    %19 = vector.broadcast %14 : vector<8x1xf32> to vector<8x64xf32>
    %20 = arith.mulf %18, %19 : vector<8x64xf32>
    %21 = vector.broadcast %15 : vector<1x64xf32> to vector<8x64xf32>
    %22 = arith.mulf %20, %21 : vector<8x64xf32>
    %23 = vector.broadcast %16 : vector<1x64xf32> to vector<8x64xf32>
    %24 = arith.addf %22, %23 : vector<8x64xf32>
    %c0_9 = arith.constant 0 : index
    %c0_10 = arith.constant 0 : index
    %25 = vector.load %arg4[%c0_9, %c0_10] : memref<8x64xf32, #tpu.memory_space<vmem>>, vector<8x64xf32>
    tpu.vector_store %arg4[%c0_9, %c0_10], %24 {strides = array<i32>} : memref<8x64xf32, #tpu.memory_space<vmem>>, vector<8x64xf32>,
    return
  }
  func.func @transform_0(%arg0: i32) -> (i32, i32) {
    %c0_i32 = arith.constant 0 : i32
    %c0_i32_0 = arith.constant 0 : i32
    return %arg0, %c0_i32 : i32, i32
  }
  func.func @transform_1(%arg0: i32) -> (i32, i32) {
    %c0_i32 = arith.constant 0 : i32
    %c0_i32_0 = arith.constant 0 : i32
    %c0_i32_1 = arith.constant 0 : i32
    return %c0_i32, %c0_i32_0 : i32, i32
  }
  func.func @transform_2(%arg0: i32) -> (i32, i32) {
    %c0_i32 = arith.constant 0 : i32
    %c0_i32_0 = arith.constant 0 : i32
    %c0_i32_1 = arith.constant 0 : i32
    return %c0_i32, %c0_i32_0 : i32, i32
  }
  func.func @transform_3(%arg0: i32) -> (i32, i32) {
    %c0_i32 = arith.constant 0 : i32
    %c0_i32_0 = arith.constant 0 : i32
    return %arg0, %c0_i32 : i32, i32
  }
}

</mosaic_0001>

<bundles_post_ra>
// kernel: tpu_custom_call.1
= control target key start
LH: loop header
LB: loop body
LE: loop exit
PB: predicated region body
PF: predicated region fallthrough
CT: control target
= control target key end

     0   :  { %8 = vsyncpa [#allocation3], 0  ;;  %s185_s0 = inlined_call_operand.hbm [shape: f32[8,64], index: 0, kind: input, shape index: {}]   ;;  %s186_s1 = inlined_call_operand.vmem [shape: f32[1,64], index: 1, kind: input, shape index: {}]   ;;  %s187_s2 = inlined_call_operand.vmem [shape: f32[1,64], index: 2, kind: input, shape index: {}]   ;;  %s188_s3 = inlined_call_operand.hbm [shape: f32[8,64], index: 3, kind: output, shape index: {}]  }
   0x1   :  { %9 = vsyncpa [#allocation4], 0  ;;  %s130_s12 = smov [#allocation2]   ;;  %s82_s16 = scalar_lea.hbm %s185_s0, 128 }
   0x2   :  { %s16_s13 = sshll.u32 %s130_s12, 4  ;;  %p83_p0 = scmp.ne.s32.totalorder %s185_s0, %s82_s16  ;;  %s17_s13 = int_to_ptr.vmem [resolvable:$true] %s16_s13 }
   0x3   :  { %p86_p1 = scmp.lt.u32.totalorder %s82_s16, %s185_s0 }
   0x5   :  { %p88_p2 = pnand %p86_p1, %p83_p0 }
   0x7   :  { %91 = shalt.err (!%p88_p2)
}
   0x8   :  { %s92_s21 = scalar_lea.vmem %s17_s13, 128  ;;  %p97_p4 = scmp.lt.s32.totalorder %s17_s13, %s17_s13 }
   0x9   :  { %p93_p3 = scmp.ne.s32.totalorder %s17_s13, %s92_s21  ;;  %p98_p5 = scmp.lt.s32.totalorder %s92_s21, %s92_s21 }
   0xb   :  { %p99_p6 = por %p98_p5, %p97_p4 }
   0xd   :  { %p100_p7 = pnand %p99_p6, %p93_p3 }
   0xf   :  { %103 = shalt.err (!%p100_p7)
}
  0x10   :  { %19 = dma.hbm_to_vmem [thread:$0]  %s185_s0, 128, %s17_s13, [#allocation3]  }
  0x11   :  { %126 = dma.done.wait [#allocation3], 128  }
  0x12   :  { %127 = vsyncadd [#allocation3], 4294967168  ;;  %vm28_vm0 = vcmask 523264   ;;  %v27_v0 = vld [vmem:[#allocation2] sm:$0xff]  ;;  %s131_s27 = smov [#allocation5]  }
  0x13   :  { %v29_v1 = vsel %vm28_vm0, %v27_v0, 0.0  ;;  %v32_v2 = vmul.f32 %v27_v0, %v27_v0  ;;  %v76_v13 = vld [vmem:[%s186_s1] ss:$0 sm:$0xff]  ;;  %s67_s28 = sshll.u32 %s131_s27, 4  ;;  %s68_s28 = int_to_ptr.vmem [resolvable:$true] %s67_s28 }
  0x14   :  { %30 = vadd.xlane.f32.xlu0 %v29_v1  ;;  %v77_v15 = vld [vmem:[%s187_s2] ss:$0 sm:$0xff]  ;;  %s104_s29 = scalar_lea.vmem %s68_s28, 128  ;;  %p109_p9 = scmp.lt.s32.totalorder %s68_s28, %s68_s28 }
  0x15   :  { %v33_v3 = vsel %vm28_vm0, %v32_v2, 0.0  ;;  %p105_p8 = scmp.ne.s32.totalorder %s68_s28, %s104_s29  ;;  %p110_p10 = scmp.lt.s32.totalorder %s104_s29, %s104_s29 }
  0x17   :  { %p111_p11 = por %p110_p10, %p109_p9 }
  0x18   :  { %34 = vadd.xlane.f32.xlu0 %v33_v3 }
  0x19   :  { %p112_p12 = pnand %p111_p11, %p105_p8 }
  0xa1   :  { %v31_v4 = vpop.xlane.xlu0 %30 }
  0xa2   :  { %v36_v5 = vmul.f32 0.015625, %v31_v4 }
  0xa4   :  { %v37_v6 = vmul.f32 %v36_v5, %v31_v4  ;;  %v44_v11 = vsub.f32 %v27_v0, %v36_v5 }
  0xa5   :  { %v35_v7 = vpop.xlane.xlu0 %34 }
  0xa6   :  { %v38_v8 = vsub.f32 %v35_v7, %v37_v6 }
  0xa8   :  { %v39_v9 = vmul.f32 0.015873017, %v38_v8 }
  0xaa   :  { %v40_v10 = vadd.f32 1e-06, %v39_v9 }
  0xac   :  { %80 = vrsqrt.f32 %v40_v10 }
  0xb6   :  { %v81_v12 = vpop.eup %80 }
  0xb7   :  { %v45_v14 = vmul.f32 %v81_v12, %v44_v11 }
  0xb9   :  { %v52_v16 = vmul.f32 %v76_v13, %v45_v14 }
  0xbb   :  { %v59_v17 = vadd.f32 %v77_v15, %v52_v16 }
  0xbd   :  { %60 = vst.msk [vmem:[#allocation5] sm:$0xff] %vm28_vm0, %v59_v17 }
  0xbe   :  { %115 = shalt.err (!%p112_p12)
}
  0xbf   :  { %s116_s4 = scalar_lea.hbm %s188_s3, 128 }
  0xc0   :  { %p117_p13 = scmp.ne.s32.totalorder %s188_s3, %s116_s4  ;;  %p120_p0 = scmp.lt.u32.totalorder %s116_s4, %s188_s3 }
  0xc2   :  { %p122_p1 = pnand %p120_p0, %p117_p13 }
  0xc4   :  { %125 = shalt.err (!%p122_p1)
}
  0xc5   :  { %70 = dma.vmem_to_hbm [thread:$0]  %s68_s28, 128, %s188_s3, [#allocation4]  }
  0xc6   :  { %128 = dma.done.wait [#allocation4], 128  }
  0xc7   :  { %129 = vsyncadd [#allocation4], 4294967168 }
  0xc8   :  { %74 = vsyncpa [#allocation3], 1 }
  0xc9   :  { %75 = vsyncpa [#allocation4], 1 }

</bundles_post_ra>
